<compile_context>
chip_gen: v7x
topology: tpu7x:2x2x1
jax: 0.10.0
libtpu: 0.0.40
codegen_flags: <defaults>
</compile_context>

<pallas_src>
import functools
import math

import jax
import jax.numpy as jnp
from jax.experimental import pallas as pl
from jax.experimental.pallas import tpu as pltpu


# ---------------------------------------------------------------------------
# Fused single-pass kernel: pool -> channel conv -> sigmoid -> scale
# ---------------------------------------------------------------------------
def _eca_fused_kernel(w_ref, x_ref, o_ref, conv_ref, *, C, k, base, inv_L):
    # w_ref   : SMEM (k,) f32            conv taps
    # x_ref   : VMEM (tr, L)             whole-batch row slab, tr = nb*C
    # o_ref   : VMEM (tr, L)             output block
    # conv_ref: VMEM (tr + 2*base, 1) f32 zero-padded staging column
    tr = x_ref.shape[0]
    pad = k // 2

    # Global average pool over L (accumulate in f32), one value per row.
    pooled = jnp.sum(x_ref[...].astype(jnp.float32), axis=-1,
                     keepdims=True) * inv_L                        # (tr, 1)

    # Stage the pooled column with `base` zero rows on both sides so every
    # conv tap is a simple static slice (aligned store, small offset reads).
    conv_ref[...] = jnp.zeros_like(conv_ref)
    conv_ref[pl.ds(base, tr), :] = pooled

    # k-tap conv along the channel (row) axis with zero padding per batch:
    #   y[c] = sum_j w[j] * pooled[c + j - pad]
    row = jax.lax.broadcasted_iota(jnp.int32, (tr, 1), 0)
    ch = row % C                                   # channel index of each row
    y = jnp.zeros((tr, 1), jnp.float32)
    for j in range(k):                             # k is a tiny static int
        d = j - pad
        contrib = conv_ref[pl.ds(base + d, tr), :]  # = pooled[r + d] (0 off-end)
        if d != 0:                                  # zero across batch bounds
            valid = jnp.logical_and(ch + d >= 0, ch + d < C)
            contrib = jnp.where(valid, contrib, 0.0)
        y = y + w_ref[j] * contrib

    gate = jax.nn.sigmoid(y).astype(x_ref.dtype)                   # (tr, 1)
    o_ref[...] = (x_ref[...] * gate).astype(o_ref.dtype)


# ---------------------------------------------------------------------------
# Two-pass fallback kernels
# ---------------------------------------------------------------------------
def _pool_sum_kernel(x_ref, sum_ref, *, L, tl, ragged):
    # x_ref  : VMEM (tr, tl) block of the (B*C, L) view of x
    # sum_ref: VMEM (tr, 1) f32 accumulator, resident across the L grid axis
    @pl.when(pl.program_id(1) == 0)
    def _():
        sum_ref[...] = jnp.zeros_like(sum_ref)

    x = x_ref[...].astype(jnp.float32)
    if ragged:  # last L block extends past the array: mask the garbage lanes
        lane = jax.lax.broadcasted_iota(jnp.int32, x.shape, 1)
        x = jnp.where(pl.program_id(1) * tl + lane < L, x, 0.0)
    sum_ref[...] += jnp.sum(x, axis=-1, keepdims=True)


def _scale_kernel(x_ref, s_ref, o_ref):
    x = x_ref[...]                                   # (tr, tl)
    o_ref[...] = (x * s_ref[...].astype(x.dtype)).astype(o_ref.dtype)


# ---------------------------------------------------------------------------
# Tiling helpers
# ---------------------------------------------------------------------------
def _sublane_multiple(dtype):
    # Sub-32-bit dtypes pack along sublanes: use 16/32-row alignment.
    return {4: 8, 2: 16, 1: 32}.get(jnp.dtype(dtype).itemsize, 8)


def _pick_batches_per_block(B, C, L, itemsize, block_budget_bytes, sublane):
    """Batches per fused block: whole batches only, row count aligned to the
    sublane pack (or equal to the full B*C extent), and >= 2 row blocks when
    B allows so both v7x TensorCores get work.  None -> two-pass fallback."""
    bytes_per_batch = C * L * itemsize
    if bytes_per_batch <= 0 or bytes_per_batch > block_budget_bytes:
        return None
    cap = min(B, max(1, block_budget_bytes // bytes_per_batch))

    def best(limit):
        for nb in range(min(cap, limit), 0, -1):
            if B % nb == 0 and ((nb * C) % sublane == 0 or nb == B):
                return nb
        return None

    if B >= 2:
        nb = best(B // 2)          # prefer >= 2 grid steps (v7x megacore)
        if nb is not None:
            return nb
    return best(B)


# ---------------------------------------------------------------------------
# Forward wrapper
# ---------------------------------------------------------------------------
def eca_forward(x, weight, k, *,
                target_block_bytes=8 * 1024 * 1024,
                vmem_limit_bytes=56 * 1024 * 1024,
                donate_x=False,
                force_two_pass=False):
    """x: (B, C, L); weight: Conv1d(1,1,k) taps (any shape flattening to (k,)).

    Defaults are safe on all generations (incl. v7x's 64 MiB/TC VMEM); on
    v5e/v6e (128 MiB VMEM) raise target_block_bytes to ~16 MiB and
    vmem_limit_bytes to ~96 MiB for slightly longer DMAs.
    """
    B, C, L = x.shape
    BC = B * C
    x2d = x.reshape(BC, L)
    w_f32 = weight.reshape(-1).astype(jnp.float32)
    itemsize = jnp.dtype(x.dtype).itemsize
    sub = _sublane_multiple(x.dtype)
    pad = k // 2

    def _params(sem):
        return pltpu.CompilerParams(dimension_semantics=sem,
                                    vmem_limit_bytes=vmem_limit_bytes)

    # ---------------- fused single-pass path (2x HBM traffic) --------------
    if not force_two_pass:
        nb = _pick_batches_per_block(B, C, L, itemsize, target_block_bytes, sub)
        if nb is not None:
            tr = nb * C
            base = max(8, ((pad + 7) // 8) * 8)   # aligned staging offset
            out2d = pl.pallas_call(
                functools.partial(_eca_fused_kernel, C=C, k=k, base=base,
                                  inv_L=1.0 / L),
                out_shape=jax.ShapeDtypeStruct((BC, L), x.dtype),
                grid=(B // nb,),
                in_specs=[pl.BlockSpec(memory_space=pltpu.MemorySpace.SMEM),
                          pl.BlockSpec((tr, L), lambda r: (r, 0))],
                out_specs=pl.BlockSpec((tr, L), lambda r: (r, 0)),
                scratch_shapes=[pltpu.VMEM((tr + 2 * base, 1), jnp.float32)],
                input_output_aliases=({1: 0} if donate_x else {}),
                compiler_params=_params(("parallel",)),
            )(w_f32, x2d)
            return out2d.reshape(B, C, L)

    # ---------------- two-pass streaming fallback (3x HBM traffic) ---------
    # Lane tile: as wide as the block budget allows at the minimum row count
    # (long contiguous DMAs, unmasked lane-dense stores); ragged tail handled
    # with a cdiv grid + in-kernel mask.
    max_tl = max(128, (target_block_bytes // (sub * itemsize)) // 128 * 128)
    tl = L if L <= max_tl else max_tl
    # Row tile: fill the block budget, keep >= 2 row blocks for v7x megacore.
    max_tr = max(sub, (target_block_bytes // (tl * itemsize)) // sub * sub)
    if BC >= 2 * sub:
        max_tr = min(max_tr, max(sub, (BC // 2) // sub * sub))
    tr = BC if BC <= max_tr else max_tr
    nr, nl = pl.cdiv(BC, tr), pl.cdiv(L, tl)
    ragged_l = (L % tl) != 0

    # Pass 1: pooled sums (B*C, 1); reduction axis last, accumulator resident.
    pooled_sum = pl.pallas_call(
        functools.partial(_pool_sum_kernel, L=L, tl=tl, ragged=ragged_l),
        out_shape=jax.ShapeDtypeStruct((BC, 1), jnp.float32),
        grid=(nr, nl),
        in_specs=[pl.BlockSpec((tr, tl), lambda r, l: (r, l))],
        out_specs=pl.BlockSpec((tr, 1), lambda r, l: (r, 0)),
        compiler_params=_params(("parallel", "arbitrary")),
    )(x2d)

    # Tiny k-tap channel conv + sigmoid on (B, C): plain JAX (microseconds).
    pooled = pooled_sum.reshape(B, C) * (1.0 / L)
    padded = jnp.pad(pooled, ((0, 0), (pad, pad)))
    y = jnp.zeros((B, C), jnp.float32)
    for j in range(k):                     # k is a tiny static int (3, 5, ...)
        y = y + w_f32[j] * padded[:, j:j + C]
    sig = jax.nn.sigmoid(y).reshape(BC, 1)                     # (B*C, 1) f32

    # Pass 2: stream x and scale by the per-row gate (broadcast over L).
    out2d = pl.pallas_call(
        _scale_kernel,
        out_shape=jax.ShapeDtypeStruct((BC, L), x.dtype),
        grid=(nr, nl),
        in_specs=[pl.BlockSpec((tr, tl), lambda r, l: (r, l)),
                  pl.BlockSpec((tr, 1), lambda r, l: (r, 0))],
        out_specs=pl.BlockSpec((tr, tl), lambda r, l: (r, l)),
        input_output_aliases=({0: 0} if donate_x else {}),
        compiler_params=_params(("parallel", "parallel")),
    )(x2d, sig)
    return out2d.reshape(B, C, L)


def eca_reference(x, weight, k):
    """Pure-JAX reference mirroring the PyTorch module."""
    B, C, L = x.shape
    w = weight.reshape(-1).astype(jnp.float32)
    pooled = jnp.mean(x.astype(jnp.float32), axis=-1)            # (B, C)
    pad = k // 2
    padded = jnp.pad(pooled, ((0, 0), (pad, pad)))
    y = jnp.zeros((B, C), jnp.float32)
    for j in range(k):
        y = y + w[j] * padded[:, j:j + C]
    return (x * jax.nn.sigmoid(y)[:, :, None].astype(x.dtype)).astype(x.dtype)


if __name__ == "__main__":
    # Module hyper-params (mirrors ECA.__init__): channel=16, gamma=2, b=1.
    channel, gamma, b = 16, 2, 1
    t = int(abs((math.log2(channel) + b) / gamma))
    k = t if t % 2 else t + 1                                    # -> k = 3

    B, C, L = 2, channel, 8
    key = jax.random.PRNGKey(0)
    kx, kw, kx2 = jax.random.split(key, 3)
    x = jax.random.normal(kx, (B, C, L), dtype=jnp.float32)
    # Conv1d(1, 1, k, bias=False) weight, shape (1, 1, k) -> squeeze to (k,)
    bound = 1.0 / math.sqrt(k)
    weight = jax.random.uniform(kw, (k,), minval=-bound, maxval=bound,
                                dtype=jnp.float32)

    # Fused single-pass path (whole (C, L) slab fits one VMEM block).
    out = jax.block_until_ready(eca_forward(x, weight, k))
    ref = eca_reference(x, weight, k)
    assert out.shape == (B, C, L)
    assert jnp.allclose(out, ref, atol=1e-5, rtol=1e-5), "fused path mismatch"

    # Two-pass streaming fallback, forced with a tiny block budget and a
    # ragged L (200 is not a multiple of the 128-lane tile) to exercise the
    # masked reduction, cdiv grids and accumulator init/finalize.
    L2 = 200
    x2 = jax.random.normal(kx2, (B, C, L2), dtype=jnp.float32)
    out2 = jax.block_until_ready(
        eca_forward(x2, weight, k, force_two_pass=True,
                    target_block_bytes=4096))
    ref2 = eca_reference(x2, weight, k)
    assert jnp.allclose(out2, ref2, atol=1e-5, rtol=1e-5), "two-pass mismatch"

    print("KERNEL_OK")
</pallas_src>

<mosaic_0001>
module attributes {stable_mosaic.version = 11 : i64} {
  func.func @_eca_fused_kernel(%arg0: i32, %arg1: memref<3xf32, #tpu.memory_space<smem>>, %arg2: memref<16x8xf32, #tpu.memory_space<vmem>>, %arg3: memref<16x8xf32, #tpu.memory_space<vmem>>, %arg4: memref<32x1xf32, #tpu.memory_space<vmem>>) attributes {dimension_semantics = [#tpu.dimension_semantics<parallel>], iteration_bounds = array<i64: 2>, scalar_prefetch = 0 : i64, scratch_operands = 1 : i64, tpu.core_type = #tpu.core_type<tc>, window_params = [{transform_indices = @transform_0, window_bounds = array<i64: 3>}, {transform_indices = @transform_1, window_bounds = array<i64: 16, 8>}, {transform_indices = @transform_2, window_bounds = array<i64: 16, 8>}]} {
    %c0 = arith.constant 0 : index
    %c0_0 = arith.constant 0 : index
    %0 = vector.load %arg2[%c0, %c0_0] : memref<16x8xf32, #tpu.memory_space<vmem>>, vector<16x8xf32>
    %cst = arith.constant dense<0.000000e+00> : vector<16xf32>
    %1 = vector.multi_reduction <add>, %0, %cst [1] : vector<16x8xf32> to vector<16xf32>
    %2 = vector.shape_cast %1 : vector<16xf32> to vector<16x1xf32>
    %cst_1 = arith.constant 1.250000e-01 : f32
    %3 = vector.broadcast %cst_1 : f32 to vector<16x1xf32>
    %4 = arith.mulf %2, %3 : vector<16x1xf32>
    %cst_2 = arith.constant 0.000000e+00 : f32
    %5 = vector.broadcast %cst_2 : f32 to vector<32x1xf32>
    %c0_3 = arith.constant 0 : index
    %c0_4 = arith.constant 0 : index
    %6 = vector.load %arg4[%c0_3, %c0_4] : memref<32x1xf32, #tpu.memory_space<vmem>>, vector<32x1xf32>
    tpu.vector_store %arg4[%c0_3, %c0_4], %5 {strides = array<i32>} : memref<32x1xf32, #tpu.memory_space<vmem>>, vector<32x1xf32>,
    %c8 = arith.constant 8 : index
    %c0_5 = arith.constant 0 : index
    %7 = vector.load %arg4[%c8, %c0_5] : memref<32x1xf32, #tpu.memory_space<vmem>>, vector<16x1xf32>
    tpu.vector_store %arg4[%c8, %c0_5], %4 {strides = array<i32>} : memref<32x1xf32, #tpu.memory_space<vmem>>, vector<16x1xf32>,
    %8 = tpu.iota {dimensions = array<i32: 0>} : vector<16x1xi32>
    %c16_i32 = arith.constant 16 : i32
    %c0_i32 = arith.constant 0 : i32
    %9 = arith.cmpi eq, %c16_i32, %c0_i32 : i32
    %c1_i32 = arith.constant 1 : i32
    %10 = arith.select %9, %c1_i32, %c16_i32 : i32
    %11 = vector.broadcast %10 : i32 to vector<16x1xi32>
    %12 = arith.remsi %8, %11 : vector<16x1xi32>
    %c0_i32_6 = arith.constant 0 : i32
    %13 = vector.broadcast %c0_i32_6 : i32 to vector<16x1xi32>
    %14 = arith.cmpi ne, %12, %13 : vector<16x1xi32>
    %c0_i32_7 = arith.constant 0 : i32
    %15 = vector.broadcast %c0_i32_7 : i32 to vector<16x1xi32>
    %16 = arith.cmpi slt, %12, %15 : vector<16x1xi32>
    %c0_i32_8 = arith.constant 0 : i32
    %17 = arith.cmpi slt, %10, %c0_i32_8 : i32
    %18 = vector.broadcast %17 : i1 to vector<16x1xi1>
    %19 = vector.broadcast %18 : vector<16x1xi1> to vector<16x1xi1>
    %20 = arith.xori %16, %19 : vector<16x1xi1>
    %21 = arith.andi %20, %14 : vector<16x1xi1>
    %22 = vector.broadcast %10 : i32 to vector<16x1xi32>
    %23 = arith.addi %12, %22 : vector<16x1xi32>
    %24 = arith.select %21, %23, %12 : vector<16x1xi1>, vector<16x1xi32>
    %cst_9 = arith.constant 0.000000e+00 : f32
    %25 = vector.broadcast %cst_9 : f32 to vector<16x1xf32>
    %c7 = arith.constant 7 : index
    %c0_10 = arith.constant 0 : index
    %26 = vector.load %arg4[%c7, %c0_10] : memref<32x1xf32, #tpu.memory_space<vmem>>, vector<16x1xf32>
    %c-1_i32 = arith.constant -1 : i32
    %27 = vector.broadcast %c-1_i32 : i32 to vector<16x1xi32>
    %28 = arith.addi %24, %27 : vector<16x1xi32>
    %c0_i32_11 = arith.constant 0 : i32
    %29 = vector.broadcast %c0_i32_11 : i32 to vector<16x1xi32>
    %30 = arith.cmpi sge, %28, %29 : vector<16x1xi32>
    %c-1_i32_12 = arith.constant -1 : i32
    %31 = vector.broadcast %c-1_i32_12 : i32 to vector<16x1xi32>
    %32 = arith.addi %24, %31 : vector<16x1xi32>
    %c16_i32_13 = arith.constant 16 : i32
    %33 = vector.broadcast %c16_i32_13 : i32 to vector<16x1xi32>
    %34 = arith.cmpi slt, %32, %33 : vector<16x1xi32>
    %35 = arith.andi %30, %34 : vector<16x1xi1>
    %cst_14 = arith.constant 0.000000e+00 : f32
    %36 = vector.broadcast %cst_14 : f32 to vector<16x1xf32>
    %37 = arith.select %35, %26, %36 : vector<16x1xi1>, vector<16x1xf32>
    %c0_15 = arith.constant 0 : index
    %38 = memref.load %arg1[%c0_15] : memref<3xf32, #tpu.memory_space<smem>>
    %39 = vector.broadcast %38 : f32 to vector<16x1xf32>
    %40 = arith.mulf %39, %37 : vector<16x1xf32>
    %41 = arith.addf %25, %40 : vector<16x1xf32>
    %c8_16 = arith.constant 8 : index
    %c0_17 = arith.constant 0 : index
    %42 = vector.load %arg4[%c8_16, %c0_17] : memref<32x1xf32, #tpu.memory_space<vmem>>, vector<16x1xf32>
    %c1 = arith.constant 1 : index
    %43 = memref.load %arg1[%c1] : memref<3xf32, #tpu.memory_space<smem>>
    %44 = vector.broadcast %43 : f32 to vector<16x1xf32>
    %45 = arith.mulf %44, %42 : vector<16x1xf32>
    %46 = arith.addf %41, %45 : vector<16x1xf32>
    %c9 = arith.constant 9 : index
    %c0_18 = arith.constant 0 : index
    %47 = vector.load %arg4[%c9, %c0_18] : memref<32x1xf32, #tpu.memory_space<vmem>>, vector<16x1xf32>
    %c1_i32_19 = arith.constant 1 : i32
    %48 = vector.broadcast %c1_i32_19 : i32 to vector<16x1xi32>
    %49 = arith.addi %24, %48 : vector<16x1xi32>
    %c0_i32_20 = arith.constant 0 : i32
    %50 = vector.broadcast %c0_i32_20 : i32 to vector<16x1xi32>
    %51 = arith.cmpi sge, %49, %50 : vector<16x1xi32>
    %c1_i32_21 = arith.constant 1 : i32
    %52 = vector.broadcast %c1_i32_21 : i32 to vector<16x1xi32>
    %53 = arith.addi %24, %52 : vector<16x1xi32>
    %c16_i32_22 = arith.constant 16 : i32
    %54 = vector.broadcast %c16_i32_22 : i32 to vector<16x1xi32>
    %55 = arith.cmpi slt, %53, %54 : vector<16x1xi32>
    %56 = arith.andi %51, %55 : vector<16x1xi1>
    %cst_23 = arith.constant 0.000000e+00 : f32
    %57 = vector.broadcast %cst_23 : f32 to vector<16x1xf32>
    %58 = arith.select %56, %47, %57 : vector<16x1xi1>, vector<16x1xf32>
    %c2 = arith.constant 2 : index
    %59 = memref.load %arg1[%c2] : memref<3xf32, #tpu.memory_space<smem>>
    %60 = vector.broadcast %59 : f32 to vector<16x1xf32>
    %61 = arith.mulf %60, %58 : vector<16x1xf32>
    %62 = arith.addf %46, %61 : vector<16x1xf32>
    %63 = arith.negf %62 : vector<16x1xf32>
    %64 = math.exp %63 : vector<16x1xf32>
    %cst_24 = arith.constant 1.000000e+00 : f32
    %65 = vector.broadcast %cst_24 : f32 to vector<16x1xf32>
    %66 = arith.addf %65, %64 : vector<16x1xf32>
    %67 = arith.divf %65, %66 : vector<16x1xf32>
    %c0_25 = arith.constant 0 : index
    %c0_26 = arith.constant 0 : index
    %68 = vector.load %arg2[%c0_25, %c0_26] : memref<16x8xf32, #tpu.memory_space<vmem>>, vector<16x8xf32>
    %69 = vector.broadcast %67 : vector<16x1xf32> to vector<16x8xf32>
    %70 = arith.mulf %68, %69 : vector<16x8xf32>
    %c0_27 = arith.constant 0 : index
    %c0_28 = arith.constant 0 : index
    %71 = vector.load %arg3[%c0_27, %c0_28] : memref<16x8xf32, #tpu.memory_space<vmem>>, vector<16x8xf32>
    tpu.vector_store %arg3[%c0_27, %c0_28], %70 {strides = array<i32>} : memref<16x8xf32, #tpu.memory_space<vmem>>, vector<16x8xf32>,
    return
  }
  func.func @transform_0(%arg0: i32) -> i32 {
    %c0_i32 = arith.constant 0 : i32
    %c0_i32_0 = arith.constant 0 : i32
    return %c0_i32 : i32
  }
  func.func @transform_1(%arg0: i32) -> (i32, i32) {
    %c0_i32 = arith.constant 0 : i32
    %c0_i32_0 = arith.constant 0 : i32
    return %arg0, %c0_i32 : i32, i32
  }
  func.func @transform_2(%arg0: i32) -> (i32, i32) {
    %c0_i32 = arith.constant 0 : i32
    %c0_i32_0 = arith.constant 0 : i32
    return %arg0, %c0_i32 : i32, i32
  }
}

</mosaic_0001>

<bundles_post_ra>
// kernel: tpu_custom_call.1
= control target key start
LH: loop header
LB: loop body
LE: loop exit
PB: predicated region body
PF: predicated region fallthrough
CT: control target
= control target key end

     0   :  { %7 = vsyncpa [#allocation4], 0  ;;  %s439_s9 = smov 0   ;;  %s502_s0 = inlined_call_operand.vmem [shape: f32[3], index: 0, kind: input, shape index: {}]   ;;  %s503_s1 = inlined_call_operand.vmem [shape: f32[32,8], index: 1, kind: input, shape index: {}]   ;;  %s504_s2 = inlined_call_operand.vmem [shape: f32[32,8], index: 2, kind: output, shape index: {}]  }
   0x1 LB: > { %s346_s10 = sadd.s32 4294967295, %s419_s9   ;;  %p348_p0 = scmp.ge.s32.totalorder %s419_s9, 1  ;;  %s419_s9 = sphi %s439_s9, %s13_s9  }
   0x2   : > { %p91_p1 = scmp.lt.s32.totalorder %s419_s9, 3  ;;  %s104_s13 = sshll.u32 %s502_s0, 4  ;;  %s105_s13 = int_to_ptr.vmem [resolvable:$true] %s104_s13 }
   0x3   : > { %p454_p3 = scmp.eq.s32.totalorder %s346_s10, 0  ;;  %s394_s16 = scalar_lea.vmem %s105_s13, 16 }
   0x4   : > { %p450_p2 = pnand %p348_p0, %p91_p1  ;;  %p395_p6 = scmp.ne.s32.totalorder %s105_s13, %s394_s16 }
   0x5   : > { %p402_p10 = scmp.lt.s32.totalorder %s105_s13, %s105_s13  ;;  %p403_p11 = scmp.lt.s32.totalorder %s394_s16, %s394_s16 }
   0x6   : > { %p367_p4 = pneg %p450_p2 }
   0x7   : > { %p404_p12 = por %p403_p11, %p402_p10 }
   0x8   : > { %p368_p5 = pnand %p454_p3, %p367_p4 }
   0xa   : > { %p396_p7 = pneg %p368_p5 }
   0xc   : > { %p397_p8 = pnand %p396_p7, %p395_p6 }
   0xe   : > { %p398_p9 = pneg %p397_p8 }
  0x10   : > { %p405_p13 = pnand %p404_p12, %p398_p9 }
  0x12   : > { %408 = shalt.err (!%p405_p13)
}
  0x13   : > { %s421_s17 = smov [#allocation3]   ;;  %126 = sbr.rel (%p450_p2) target bundleno = 358 (0x166), region = 28 }
  0x14   : > { %370 = dma.vmem_to_smem (!%p368_p5), %s105_s13, 16, %s421_s17, [#allocation4]  }
  0x1a   : > { %414 = dma.done.wait (%p454_p3), [#allocation4], 16  }
  0x1b   : > { %416 = vsyncadd (%p454_p3), [#allocation4], 4294967280 }
  0x1c   : > { %132 = sfence }
  0x1d   : > { %s353_s18 = sshll.u32 %s346_s10, 1  ;;  %vm172_vm0 = vcmask 7168   ;;  %v422_v0 = vmov 0.0   ;;  %vm163_vm1 = vcmask 64512   ;;  %v423_v5 = vmov 0   ;;  %s357_s23 = sld [smem:[#allocation3 + $0x1]] }
  0x1e   : > { %p150_p0 = scmp.lt.s32.totalorder %s353_s18, 3  ;;  %173 = vst.msk [vmem:[#allocation2] sm:$0xff] %vm172_vm0, %v422_v0  ;;  %174 = vst.msk [vmem:[#allocation2 + $0x8] sm:$0xff] %vm172_vm0, %v422_v0  ;;  %384 = vset.pattern.permute.xlu1 %v423_v5  ;;  %385 = vset.pattern.permute.xlu0 %v423_v5  ;;  %v179_v6 = vlaneseq  ;;  %s218_s24 = sld [smem:[#allocation3]] }
  0x1f   : > { %176 = vst.msk [vmem:[#allocation2 + $0x18] sm:$0xff] %vm172_vm0, %v422_v0  ;;  %175 = vst.msk [vmem:[#allocation2 + $0x10] sm:$0xff] %vm172_vm0, %v422_v0  ;;  %s358_s25 = sld [smem:[#allocation3 + $0x2]] }
  0x20   : > { %s508_s18 = smov (!%p150_p0, %s353_s18), 3  ;;  %v180_v7 = vshrl.u32 %v179_v6, 7 }
  0x21   : > { %s354_s19 = sshll.u32 %s508_s18, 3 }
  0x22   : > { %s153_s22 = scalar_lea.vmem %s503_s1, %s354_s19  ;;  %v181_v9 = vadd.s32 8, %v180_v7  ;;  %v186_v10 = vand.u32 15, %v180_v7  ;;  %s159_s28 = scalar_lea.vmem %s504_s2, %s354_s19 }
  0x23   : > { %v480_v1 = vld [vmem:[%s153_s22] sm:$0xff]  ;;  %v482_v2 = vld [vmem:[%s153_s22 + $0x8] sm:$0xff]  ;;  %v227_v16 = vstv %s357_s23 }
  0x24   : > { %v164_v3 = vsel %vm163_vm1, %v480_v1, 0.0  ;;  %v167_v4 = vsel %vm163_vm1, %v482_v2, 0.0  ;;  %v193_v13 = vand.u32 15, %v181_v9  ;;  %v208_v14 = vadd.s32 4294967295, %v186_v10 }
  0x25   : > { %165 = vadd.xlane.f32.xlu0 %v164_v3  ;;  %v219_v18 = vstv %s218_s24  ;;  %v245_v24 = vstv %s358_s25 }
  0x26   : > { %vm210_vm2 = vcmp.ge.s32.totalorder %v208_v14, 0  ;;  %v235_v17 = vadd.s32 1, %v193_v13 }
  0x28   : > { %vm239_vm3 = vcmp.lt.s32.totalorder %v235_v17, 16 }
  0x29   : > { %168 = vadd.xlane.f32.xlu0 %v167_v4 }
  0xb2   : > { %v166_v8 = vpop.xlane.xlu0 %165 }
  0xb3   : > { %v170_v11 = vmul.f32 0.125, %v166_v8 }
  0xb5   : > { %177 = vst.msk [vmem:[#allocation2 + $0x8] sm:$0xff] %vm172_vm0, %v170_v11 }
  0xb6   : > { %v169_v12 = vpop.xlane.xlu0 %168 }
  0xb7   : > { %v171_v15 = vmul.f32 0.125, %v169_v12 }
  0xb9   : > { %178 = vst.msk [vmem:[#allocation2 + $0x10] sm:$0xff] %vm172_vm0, %v171_v15 }
  0xbc   : > { %v206_v19 = vld [vmem:[#allocation2 + $0x7] sm:$0xff] }
  0xbd   : > { %v224_v20 = vld [vmem:[#allocation2 + $0x8] sm:$0xff]  ;;  %v216_v21 = vsel %vm210_vm2, %v206_v19, 0.0 }
  0xbe   : > { %v228_v22 = vmul.f32 %v227_v16, %v224_v20  ;;  %v220_v23 = vmul.f32 %v219_v18, %v216_v21 }
  0xc0   : > { %v230_v25 = vadd.f32 %v228_v22, %v220_v23  ;;  %v232_v26 = vld [vmem:[#allocation2 + $0x9] sm:$0xff]  ;;  %v233_v27 = vld [vmem:[#allocation2 + $0x11] sm:$0xff] }
  0xc1   : > { %v207_v28 = vld [vmem:[#allocation2 + $0xf] sm:$0xff]  ;;  %v243_v29 = vsel %vm239_vm3, %v233_v27, 0.0  ;;  %v246_v30 = vmul.f32 %v245_v24, %v232_v26 }
  0xc2   : > { %v221_v31 = vmul.f32 %v219_v18, %v207_v28  ;;  %v225_v32 = vld [vmem:[#allocation2 + $0x10] sm:$0xff]  ;;  %v247_v33 = vmul.f32 %v245_v24, %v243_v29 }
  0xc3   : > { %v229_v34 = vmul.f32 %v227_v16, %v225_v32  ;;  %v248_v35 = vadd.f32 %v246_v30, %v230_v25 }
  0xc5   : > { %v231_v36 = vadd.f32 %v229_v34, %v221_v31  ;;  %v359_v37 = vmul.f32 -1.442695, %v248_v35 }
  0xc7   : > { %v249_v38 = vadd.f32 %v247_v33, %v231_v36  ;;  %386 = vpow2.f32 %v359_v37 }
  0xc9   : > { %v360_v39 = vmul.f32 -1.442695, %v249_v38 }
  0xcb   : > { %388 = vpow2.f32 %v360_v39 }
  0xd1   : > { %v387_v40 = vpop.eup %386 }
  0xd2   : > { %v256_v41 = vadd.f32 1.0, %v387_v40 }
  0xd4   : > { %390 = vrcp.f32 %v256_v41 }
  0xd5   : > { %v389_v42 = vpop.eup %388 }
  0xd6   : > { %v257_v43 = vadd.f32 1.0, %v389_v42 }
  0xd8   : > { %392 = vrcp.f32 %v257_v43 }
  0xde   : > { %v391_v44 = vpop.eup %390 }
  0xdf   : > { %266 = vperm.xlu1 %384, %v391_v44  }
  0xe2   : > { %v393_v45 = vpop.eup %392 }
  0xe3   : > { %271 = vperm.xlu1 %384, %v393_v45  }
 0x15e   : > { %v267_v46 = vpop.permute.xlu1 %266 }
 0x15f   : > { %v274_v47 = vmul.f32 %v267_v46, %v480_v1 }
 0x161   : > { %276 = vst.msk [vmem:[%s159_s28] sm:$0xff] %vm163_vm1, %v274_v47 }
 0x162   : > { %v272_v48 = vpop.permute.xlu1 %271 }
 0x163   : > { %v275_v49 = vmul.f32 %v272_v48, %v482_v2 }
 0x165   : > { %277 = vst.msk [vmem:[%s159_s28 + $0x8] sm:$0xff] %vm163_vm1, %v275_v49 }
 0x166 PF: > { %s13_s9 = sadd.s32 1, %s419_s9  }
 0x167   : > { %p10_p1 = scmp.ge.s32.totalorder %s13_s9, 4  }
 0x169   :  { %12 = sbr.rel (!%p10_p1) target bundleno = 1 (0x1), region = 63 }
 0x170   :  { %300 = vsyncpa [#allocation4], 1 }
 0x171   :  { %302 = vsyncpa [#allocation4 + $0x1], 1 }

</bundles_post_ra>
